<compile_context>
chip_gen: v7x
topology: tpu7x:2x2x1
jax: 0.10.0
libtpu: 0.0.40
codegen_flags: <defaults>
</compile_context>

<pallas_src>
import functools
import math

import jax
import jax.numpy as jnp
from jax import lax
from jax.experimental import pallas as pl
from jax.experimental.pallas import tpu as pltpu


_LN_EPS = 1e-12  # BERT default


# ----------------------------- in-kernel helpers -----------------------------

def _layernorm(x, gamma, beta):
    mu = jnp.mean(x, axis=-1, keepdims=True)
    var = jnp.mean((x - mu) ** 2, axis=-1, keepdims=True)
    return (x - mu) * lax.rsqrt(var + _LN_EPS) * gamma + beta


def _vmem_limit_bytes():
    # ~3/4 of physical VMEM: <=48 MiB on v7x (64 MiB part), ~96 MiB on v5e/v6e (128 MiB).
    try:
        cap = pltpu.get_tpu_info().vmem_capacity_bytes
        return int(min(cap * 3 // 4, 100 * 1024 * 1024))
    except Exception:
        return 48 * 1024 * 1024


def _pick_tile(n, target):
    """Largest multiple of 8 <= target that divides n (falls back to n)."""
    if n <= target:
        return n
    t = (target // 8) * 8
    while t >= 8:
        if n % t == 0:
            return t
        t -= 8
    return n


# Grid-invariant weights: whole array resident in VMEM (single-buffered, no per-step DMA).
_WEIGHT_SPEC = pl.BlockSpec(memory_space=pltpu.MemorySpace.VMEM)


# ------------------------------- Pallas kernels -------------------------------

def qkv_proj_kernel(x_ref, wqkv_ref, bqkv_ref, ing_ref, inb_ref,
                    q_ref, k_ref, v_ref, *, num_heads, apply_input_ln):
    # x_ref: (1, ts, H) bf16.  Outputs: q/k/v (1, nh, ts, hd) bf16 (head-major).
    x = x_ref[0].astype(jnp.float32)
    if apply_input_ln:                                   # fused embedding LayerNorm
        x = _layernorm(x, ing_ref[...], inb_ref[...])
    H = x.shape[1]
    hd = H // num_heads
    qkv = jnp.dot(x.astype(jnp.bfloat16), wqkv_ref[...],
                  preferred_element_type=jnp.float32) + bqkv_ref[...]
    qkv_bf = qkv.astype(jnp.bfloat16)                    # single bf16 cast
    # One-time head-major relayout (static slices / stores).
    for h in range(num_heads):
        q_ref[0, h] = qkv_bf[:, h * hd:(h + 1) * hd]
        k_ref[0, h] = qkv_bf[:, H + h * hd:H + (h + 1) * hd]
        v_ref[0, h] = qkv_bf[:, 2 * H + h * hd:2 * H + (h + 1) * hd]


def attn_ffn_kernel(x_ref, mask_ref, q_ref, k_ref, v_ref,
                    wo_ref, bo_ref, ln1_g_ref, ln1_b_ref,
                    w1_ref, b1_ref, w2_ref, b2_ref,
                    ln2_g_ref, ln2_b_ref, ing_ref, inb_ref,
                    *rest, num_heads, n_f_chunks, f_chunk,
                    apply_input_ln, with_cls):
    if with_cls:
        clsw_ref, clsb_ref, logits_ref = rest
    else:
        (o_ref,) = rest

    x = x_ref[0].astype(jnp.float32)                     # (tq, H) f32
    if apply_input_ln:                                   # same LN as the QKV kernel (layer 0)
        x = _layernorm(x, ing_ref[...], inb_ref[...])
    tq, H = x.shape
    hd = H // num_heads

    # ---- attention: all heads batched; (nh, tq, S) scores, no (S,S) slab ----
    qh = q_ref[0]                                        # (nh, tq, hd) bf16
    kh = k_ref[0]                                        # (nh, S,  hd) bf16
    vh = v_ref[0]                                        # (nh, S,  hd) bf16
    S = kh.shape[1]
    # key bias kept as a (1,1,S) row; broadcast happens at add time.
    key_bias = ((1.0 - mask_ref[0]) * -1e9).reshape(1, 1, S)
    scale = 1.0 / math.sqrt(hd)

    s = jnp.einsum('nqd,nkd->nqk', qh, kh,
                   preferred_element_type=jnp.float32) * scale
    s = s + key_bias
    s = s - jnp.max(s, axis=-1, keepdims=True)
    p = jnp.exp(s)
    p = p * pl.reciprocal(jnp.sum(p, axis=-1, keepdims=True), approx=True)
    ctx = jnp.einsum('nqk,nkd->nqd', p.astype(jnp.bfloat16), vh,
                     preferred_element_type=jnp.float32)  # (nh, tq, hd) f32

    # ---- output projection: per-head accumulation (live set = one head) ----
    acc = jnp.zeros((tq, H), jnp.float32)
    for h in range(num_heads):
        acc = acc + jnp.dot(ctx[h].astype(jnp.bfloat16), wo_ref[h],
                            preferred_element_type=jnp.float32)
    attn = acc + bo_ref[...]
    x1 = _layernorm(x + attn, ln1_g_ref[...], ln1_b_ref[...])

    # ---- FFN tiled over F: no (tq, F) f32 intermediate ----
    x1_bf = x1.astype(jnp.bfloat16)

    def f_body(fc, acc_f):
        start = pl.multiple_of(fc * f_chunk, f_chunk)
        w1c = w1_ref[pl.ds(start, f_chunk), :]           # (tf, H) bf16
        w2c = w2_ref[pl.ds(start, f_chunk), :]           # (tf, H) bf16
        b1c = b1_ref[fc]                                 # (1, tf) f32
        hc = lax.dot_general(x1_bf, w1c, (((1,), (1,)), ((), ())),
                             preferred_element_type=jnp.float32) + b1c
        # TODO(synk): HF BERT uses exact erf-GELU; tanh-approx used for EUP lowering.
        hc = jax.nn.gelu(hc, approximate=True)
        return acc_f + jnp.dot(hc.astype(jnp.bfloat16), w2c,
                               preferred_element_type=jnp.float32)

    ffn = lax.fori_loop(0, n_f_chunks, f_body, jnp.zeros((tq, H), jnp.float32))
    ffn = ffn + b2_ref[...]
    y = _layernorm(x1 + ffn, ln2_g_ref[...], ln2_b_ref[...])

    if with_cls:
        # Only the CLS row is consumed downstream: fuse the classifier matmul and
        # skip the full (B, S, H) last-hidden-state writeback.
        y0 = y[0:1, :].astype(jnp.bfloat16)
        logits_ref[0] = (jnp.dot(y0, clsw_ref[...],
                                 preferred_element_type=jnp.float32) + clsb_ref[...])
    else:
        o_ref[0] = y.astype(o_ref.dtype)


# ------------------------------ pallas_call wrappers ------------------------------

def qkv_proj_pallas(x, lw, *, in_ln, num_heads, seq_tile, vmem_limit):
    B, S, H = x.shape
    hd = H // num_heads
    n_s = S // seq_tile
    apply_ln = in_ln is not None
    if in_ln is None:                                    # dummies (not traced when unused)
        in_ln = (jnp.ones((1, H), jnp.float32), jnp.zeros((1, H), jnp.float32))

    kernel = functools.partial(qkv_proj_kernel, num_heads=num_heads,
                               apply_input_ln=apply_ln)
    flops = 2 * B * S * H * 3 * H
    bytes_accessed = int(x.size * 2 + lw["wqkv"].size * 2 + lw["bqkv"].size * 4
                         + 3 * B * num_heads * S * hd * 2)

    out_sds = jax.ShapeDtypeStruct((B, num_heads, S, hd), jnp.bfloat16)
    qkv_spec = pl.BlockSpec((1, num_heads, seq_tile, hd), lambda b, s: (b, 0, s, 0))
    return pl.pallas_call(
        kernel,
        out_shape=(out_sds, out_sds, out_sds),
        grid_spec=pltpu.PrefetchScalarGridSpec(
            num_scalar_prefetch=0,
            grid=(B, n_s),
            in_specs=[
                pl.BlockSpec((1, seq_tile, H), lambda b, s: (b, s, 0)),
                _WEIGHT_SPEC, _WEIGHT_SPEC, _WEIGHT_SPEC, _WEIGHT_SPEC,
            ],
            out_specs=(qkv_spec, qkv_spec, qkv_spec),
        ),
        compiler_params=pltpu.CompilerParams(
            dimension_semantics=("parallel", "parallel"),
            vmem_limit_bytes=vmem_limit),
        cost_estimate=pl.CostEstimate(flops=int(flops), transcendentals=0,
                                      bytes_accessed=bytes_accessed),
    )(x, lw["wqkv"], lw["bqkv"], in_ln[0], in_ln[1])


def attn_ffn_pallas(x, mask3, q, k, v, lw, *, in_ln, num_heads, q_tile, n_q_tiles,
                    vmem_limit, cls_w=None, cls_b=None):
    B, S, H = x.shape
    hd = H // num_heads
    F = lw["w1"].shape[0]
    f_chunk = _pick_tile(F, 512)
    n_f_chunks = F // f_chunk
    with_cls = cls_w is not None
    apply_ln = in_ln is not None
    if in_ln is None:
        in_ln = (jnp.ones((1, H), jnp.float32), jnp.zeros((1, H), jnp.float32))

    b1_chunked = lw["b1"].reshape(n_f_chunks, 1, f_chunk)

    kernel = functools.partial(attn_ffn_kernel, num_heads=num_heads,
                               n_f_chunks=n_f_chunks, f_chunk=f_chunk,
                               apply_input_ln=apply_ln, with_cls=with_cls)

    in_specs = [
        pl.BlockSpec((1, q_tile, H), lambda b, qi: (b, qi, 0)),                 # x q-tile
        pl.BlockSpec((1, 1, S), lambda b, qi: (b, 0, 0)),                       # key mask
        pl.BlockSpec((1, num_heads, q_tile, hd), lambda b, qi: (b, 0, qi, 0)),  # Q tile
        pl.BlockSpec((1, num_heads, S, hd), lambda b, qi: (b, 0, 0, 0)),        # K (full S)
        pl.BlockSpec((1, num_heads, S, hd), lambda b, qi: (b, 0, 0, 0)),        # V (full S)
    ] + [_WEIGHT_SPEC] * (12 + (2 if with_cls else 0))

    rows = B * n_q_tiles * q_tile
    flops = rows * (4 * H * S + 2 * H * H + 4 * H * F)
    trans = rows * (num_heads * S + F)
    bytes_accessed = (rows * H * 2 * 2 + B * 3 * num_heads * S * hd * 2
                      + int(lw["wo"].size + lw["w1"].size + lw["w2"].size) * 2)

    if with_cls:
        Lp = cls_w.shape[1]
        out_shape = jax.ShapeDtypeStruct((B, 1, Lp), jnp.float32)
        out_specs = pl.BlockSpec((1, 1, Lp), lambda b, qi: (b, 0, 0))
    else:
        out_shape = jax.ShapeDtypeStruct((B, S, H), jnp.bfloat16)
        out_specs = pl.BlockSpec((1, q_tile, H), lambda b, qi: (b, qi, 0))

    args = [x, mask3, q, k, v,
            lw["wo"], lw["bo"], lw["ln1_g"], lw["ln1_b"],
            lw["w1"], b1_chunked, lw["w2"], lw["b2"],
            lw["ln2_g"], lw["ln2_b"], in_ln[0], in_ln[1]]
    if with_cls:
        args += [cls_w, cls_b]

    return pl.pallas_call(
        kernel,
        out_shape=out_shape,
        grid_spec=pltpu.PrefetchScalarGridSpec(
            num_scalar_prefetch=0,
            grid=(B, n_q_tiles),
            in_specs=in_specs,
            out_specs=out_specs,
        ),
        compiler_params=pltpu.CompilerParams(
            dimension_semantics=("parallel", "parallel"),
            vmem_limit_bytes=vmem_limit),
        cost_estimate=pl.CostEstimate(flops=int(flops), transcendentals=int(trans),
                                      bytes_accessed=int(bytes_accessed)),
    )(*args)


# --------------------------------- full forward ---------------------------------

def bert_cls_forward(params, input_ids, attention_mask, *, num_heads, label_dim):
    B, S = input_ids.shape
    vmem_limit = _vmem_limit_bytes()
    seq_tile = _pick_tile(S, 256)
    q_tile = _pick_tile(S, 128)

    # Embedding gather (glue, plain JAX): word + position + token-type(=0) embeddings.
    emb = (params["word_emb"][input_ids]
           + params["pos_emb"][:S][None, :, :]
           + params["type_emb"][0][None, None, :]).astype(jnp.float32)
    x = emb.astype(jnp.bfloat16)                         # bf16 activations between layers
    mask3 = attention_mask.reshape(B, 1, S).astype(jnp.float32)

    n_layers = len(params["layers"])
    for li, lw in enumerate(params["layers"]):
        in_ln = (params["emb_ln_g"], params["emb_ln_b"]) if li == 0 else None
        q, k, v = qkv_proj_pallas(x, lw, in_ln=in_ln, num_heads=num_heads,
                                  seq_tile=seq_tile, vmem_limit=vmem_limit)
        if li == n_layers - 1:
            # Last layer: compute only the first q-tile (CLS row lives there) and fuse
            # the classifier matmul; never write the full (B, S, H) hidden state.
            logits_p = attn_ffn_pallas(
                x, mask3, q, k, v, lw, in_ln=in_ln, num_heads=num_heads,
                q_tile=q_tile, n_q_tiles=1, vmem_limit=vmem_limit,
                cls_w=params["cls_w"], cls_b=params["cls_b"])
            return logits_p[:, 0, :label_dim]
        x = attn_ffn_pallas(x, mask3, q, k, v, lw, in_ln=in_ln, num_heads=num_heads,
                            q_tile=q_tile, n_q_tiles=S // q_tile, vmem_limit=vmem_limit)


# ------------------------------ pure-JAX reference ------------------------------
# Mirrors the kernel numerics: bf16 MXU operands, f32 accumulation, f32 LN/softmax.

def _ref_layer(x_bf, mask_row, lw, num_heads, in_ln):
    x = x_bf.astype(jnp.float32)
    if in_ln is not None:
        x = _layernorm(x, in_ln[0][0], in_ln[1][0])
    S, H = x.shape
    hd = H // num_heads
    key_bias = (1.0 - mask_row) * -1e9                   # (S,)

    qkv = jnp.dot(x.astype(jnp.bfloat16), lw["wqkv"],
                  preferred_element_type=jnp.float32) + lw["bqkv"][0]
    qkv_bf = qkv.astype(jnp.bfloat16)
    scale = 1.0 / math.sqrt(hd)
    acc = jnp.zeros((S, H), jnp.float32)
    for h in range(num_heads):
        qh = qkv_bf[:, h * hd:(h + 1) * hd]
        kh = qkv_bf[:, H + h * hd:H + (h + 1) * hd]
        vh = qkv_bf[:, 2 * H + h * hd:2 * H + (h + 1) * hd]
        s = jnp.dot(qh, kh.T, preferred_element_type=jnp.float32) * scale
        s = s + key_bias[None, :]
        s = s - jnp.max(s, axis=-1, keepdims=True)
        p = jnp.exp(s)
        p = p / jnp.sum(p, axis=-1, keepdims=True)
        ctx_h = jnp.dot(p.astype(jnp.bfloat16), vh, preferred_element_type=jnp.float32)
        acc = acc + jnp.dot(ctx_h.astype(jnp.bfloat16), lw["wo"][h],
                            preferred_element_type=jnp.float32)
    attn = acc + lw["bo"][0]
    x1 = _layernorm(x + attn, lw["ln1_g"][0], lw["ln1_b"][0])
    x1_bf = x1.astype(jnp.bfloat16)
    hmid = jnp.dot(x1_bf, lw["w1"].T, preferred_element_type=jnp.float32) + lw["b1"][0]
    hmid = jax.nn.gelu(hmid, approximate=True)
    ffn = jnp.dot(hmid.astype(jnp.bfloat16), lw["w2"],
                  preferred_element_type=jnp.float32) + lw["b2"][0]
    y = _layernorm(x1 + ffn, lw["ln2_g"][0], lw["ln2_b"][0])
    return y.astype(jnp.bfloat16)


def bert_cls_reference(params, input_ids, attention_mask, *, num_heads, label_dim):
    B, S = input_ids.shape
    H = params["word_emb"].shape[1]
    emb = (params["word_emb"][input_ids]
           + params["pos_emb"][:S][None, :, :]
           + params["type_emb"][0][None, None, :]).astype(jnp.float32)
    x = emb.astype(jnp.bfloat16)
    mask_f = attention_mask.astype(jnp.float32)
    for li, lw in enumerate(params["layers"]):
        in_ln = (params["emb_ln_g"], params["emb_ln_b"]) if li == 0 else None
        x = jax.vmap(lambda xi, mi: _ref_layer(xi, mi, lw, num_heads, in_ln))(x, mask_f)
    cls_feat = jnp.reshape(x[:, 0, :], (-1, H))
    logits = (jnp.dot(cls_feat, params["cls_w"], preferred_element_type=jnp.float32)
              + params["cls_b"])
    return logits[:, :label_dim]


# ----------------------------- deterministic init -----------------------------

def init_params(key, *, vocab, max_pos, type_vocab, hidden, ffn, n_layers,
                label_dim, num_heads):
    hd = hidden // num_heads
    lp = max(128, ((label_dim + 127) // 128) * 128)      # lane-dense classifier (padded once)
    ks = iter(jax.random.split(key, 16 + 16 * n_layers))
    s = 0.02

    def nrm(shape, dtype=jnp.bfloat16):
        return (s * jax.random.normal(next(ks), shape)).astype(dtype)

    cls_w = jnp.zeros((hidden, lp), jnp.bfloat16).at[:, :label_dim].set(
        nrm((hidden, label_dim)))
    cls_b = jnp.zeros((1, lp), jnp.float32).at[:, :label_dim].set(
        nrm((1, label_dim), jnp.float32))

    params = {
        "word_emb": nrm((vocab, hidden), jnp.float32),
        "pos_emb": nrm((max_pos, hidden), jnp.float32),
        "type_emb": nrm((type_vocab, hidden), jnp.float32),
        "emb_ln_g": 1.0 + nrm((1, hidden), jnp.float32),
        "emb_ln_b": nrm((1, hidden), jnp.float32),
        "cls_w": cls_w,                                  # (H, Lpad) bf16, padded at init
        "cls_b": cls_b,                                  # (1, Lpad) f32
        "layers": [],
    }
    for _ in range(n_layers):
        lw = {
            "wqkv": nrm((hidden, 3 * hidden)),           # fused Q|K|V, bf16
            "bqkv": nrm((1, 3 * hidden), jnp.float32),
            "wo": nrm((num_heads, hd, hidden)),          # head-major output projection
            "bo": nrm((1, hidden), jnp.float32),
            "ln1_g": 1.0 + nrm((1, hidden), jnp.float32),
            "ln1_b": nrm((1, hidden), jnp.float32),
            "w1": nrm((ffn, hidden)),                    # (F, H): hmid = x @ w1^T
            "b1": nrm((1, ffn), jnp.float32),
            "w2": nrm((ffn, hidden)),                    # (F, H): out = hmid @ w2
            "b2": nrm((1, hidden), jnp.float32),
            "ln2_g": 1.0 + nrm((1, hidden), jnp.float32),
            "ln2_b": nrm((1, hidden), jnp.float32),
        }
        params["layers"].append(lw)
    return params


# ------------------------------------- main -------------------------------------

if __name__ == "__main__":
    B, S = 2, 8
    HIDDEN, HEADS, FFN, LAYERS = 32, 2, 64, 2
    VOCAB, MAX_POS, TYPE_VOCAB = 100, 16, 2
    LABEL_DIM = 4

    key = jax.random.PRNGKey(0)
    k_param, k_ids = jax.random.split(key)
    params = init_params(k_param, vocab=VOCAB, max_pos=MAX_POS, type_vocab=TYPE_VOCAB,
                         hidden=HIDDEN, ffn=FFN, n_layers=LAYERS,
                         label_dim=LABEL_DIM, num_heads=HEADS)

    input_ids = jax.random.randint(k_ids, (B, S), 0, VOCAB, dtype=jnp.int32)
    attention_mask = jnp.ones((B, S), jnp.int32).at[1, 6:].set(0)  # pad last 2 of sample 1

    logits = bert_cls_forward(params, input_ids, attention_mask,
                              num_heads=HEADS, label_dim=LABEL_DIM)
    logits = jax.block_until_ready(logits)
    assert logits.shape == (B, LABEL_DIM)

    ref = bert_cls_reference(params, input_ids, attention_mask,
                             num_heads=HEADS, label_dim=LABEL_DIM)
    assert jnp.allclose(logits, ref, atol=1e-2, rtol=1e-2), (logits, ref)

    print("KERNEL_OK")
</pallas_src>

<mosaic_0001>
module attributes {stable_mosaic.version = 11 : i64} {
  func.func @qkv_proj_kernel(%arg0: i32, %arg1: i32, %arg2: memref<1x8x32xbf16, #tpu.memory_space<vmem>>, %arg3: memref<32x96xbf16, #tpu.memory_space<vmem>>, %arg4: memref<1x96xf32, #tpu.memory_space<vmem>>, %arg5: memref<1x32xf32, #tpu.memory_space<vmem>>, %arg6: memref<1x32xf32, #tpu.memory_space<vmem>>, %arg7: memref<1x2x8x16xbf16, #tpu.memory_space<vmem>>, %arg8: memref<1x2x8x16xbf16, #tpu.memory_space<vmem>>, %arg9: memref<1x2x8x16xbf16, #tpu.memory_space<vmem>>) attributes {dimension_semantics = [#tpu.dimension_semantics<parallel>, #tpu.dimension_semantics<parallel>], iteration_bounds = array<i64: 2, 1>, scalar_prefetch = 0 : i64, scratch_operands = 0 : i64, tpu.core_type = #tpu.core_type<tc>, window_params = [{transform_indices = @transform_0, window_bounds = array<i64: 1, 8, 32>}, {pipeline_mode = #tpu.pipeline_mode<synchronous>, transform_indices = @transform_1, window_bounds = array<i64: 32, 96>}, {pipeline_mode = #tpu.pipeline_mode<synchronous>, transform_indices = @transform_2, window_bounds = array<i64: 1, 96>}, {pipeline_mode = #tpu.pipeline_mode<synchronous>, transform_indices = @transform_3, window_bounds = array<i64: 1, 32>}, {pipeline_mode = #tpu.pipeline_mode<synchronous>, transform_indices = @transform_4, window_bounds = array<i64: 1, 32>}, {transform_indices = @transform_5, window_bounds = array<i64: 1, 2, 8, 16>}, {transform_indices = @transform_6, window_bounds = array<i64: 1, 2, 8, 16>}, {transform_indices = @transform_7, window_bounds = array<i64: 1, 2, 8, 16>}]} {
    %c0 = arith.constant 0 : index
    %c0_0 = arith.constant 0 : index
    %c0_1 = arith.constant 0 : index
    %0 = vector.load %arg2[%c0, %c0_0, %c0_1] : memref<1x8x32xbf16, #tpu.memory_space<vmem>>, vector<1x8x32xbf16>
    %1 = vector.shape_cast %0 : vector<1x8x32xbf16> to vector<8x32xbf16>
    %2 = arith.extf %1 : vector<8x32xbf16> to vector<8x32xf32>
    %c0_2 = arith.constant 0 : index
    %c0_3 = arith.constant 0 : index
    %3 = vector.load %arg5[%c0_2, %c0_3] : memref<1x32xf32, #tpu.memory_space<vmem>>, vector<1x32xf32>
    %c0_4 = arith.constant 0 : index
    %c0_5 = arith.constant 0 : index
    %4 = vector.load %arg6[%c0_4, %c0_5] : memref<1x32xf32, #tpu.memory_space<vmem>>, vector<1x32xf32>
    %cst = arith.constant dense<0.000000e+00> : vector<8xf32>
    %5 = vector.multi_reduction <add>, %2, %cst [1] : vector<8x32xf32> to vector<8xf32>
    %6 = vector.shape_cast %5 : vector<8xf32> to vector<8x1xf32>
    %cst_6 = arith.constant 3.200000e+01 : f32
    %7 = vector.broadcast %cst_6 : f32 to vector<8x1xf32>
    %8 = arith.divf %6, %7 : vector<8x1xf32>
    %9 = vector.broadcast %8 : vector<8x1xf32> to vector<8x32xf32>
    %10 = arith.subf %2, %9 : vector<8x32xf32>
    %11 = arith.mulf %10, %10 : vector<8x32xf32>
    %cst_7 = arith.constant dense<0.000000e+00> : vector<8xf32>
    %12 = vector.multi_reduction <add>, %11, %cst_7 [1] : vector<8x32xf32> to vector<8xf32>
    %13 = vector.shape_cast %12 : vector<8xf32> to vector<8x1xf32>
    %cst_8 = arith.constant 3.200000e+01 : f32
    %14 = vector.broadcast %cst_8 : f32 to vector<8x1xf32>
    %15 = arith.divf %13, %14 : vector<8x1xf32>
    %16 = vector.broadcast %8 : vector<8x1xf32> to vector<8x32xf32>
    %17 = arith.subf %2, %16 : vector<8x32xf32>
    %cst_9 = arith.constant 9.99999996E-13 : f32
    %18 = vector.broadcast %cst_9 : f32 to vector<8x1xf32>
    %19 = arith.addf %15, %18 : vector<8x1xf32>
    %20 = math.rsqrt %19 : vector<8x1xf32>
    %21 = vector.broadcast %20 : vector<8x1xf32> to vector<8x32xf32>
    %22 = arith.mulf %17, %21 : vector<8x32xf32>
    %23 = vector.broadcast %3 : vector<1x32xf32> to vector<8x32xf32>
    %24 = arith.mulf %22, %23 : vector<8x32xf32>
    %25 = vector.broadcast %4 : vector<1x32xf32> to vector<8x32xf32>
    %26 = arith.addf %24, %25 : vector<8x32xf32>
    %27 = arith.truncf %26 : vector<8x32xf32> to vector<8x32xbf16>
    %c0_10 = arith.constant 0 : index
    %c0_11 = arith.constant 0 : index
    %28 = vector.load %arg3[%c0_10, %c0_11] : memref<32x96xbf16, #tpu.memory_space<vmem>>, vector<32x96xbf16>
    %cst_12 = arith.constant dense<0.000000e+00> : vector<8x96xf32>
    %29 = tpu.matmul %27, %28, %cst_12 {dimension_numbers = #tpu.dot_dimension_numbers<[1], [0], [0], [1], [0, 0, 1, 1], [], []>} : vector<8x32xbf16>, vector<32x96xbf16>, vector<8x96xf32> -> vector<8x96xf32>
    %c0_13 = arith.constant 0 : index
    %c0_14 = arith.constant 0 : index
    %30 = vector.load %arg4[%c0_13, %c0_14] : memref<1x96xf32, #tpu.memory_space<vmem>>, vector<1x96xf32>
    %31 = vector.broadcast %30 : vector<1x96xf32> to vector<8x96xf32>
    %32 = arith.addf %29, %31 : vector<8x96xf32>
    %33 = arith.truncf %32 : vector<8x96xf32> to vector<8x96xbf16>
    %34 = vector.extract_strided_slice %33 {offsets = [0, 0], sizes = [8, 16], strides = [1, 1]} : vector<8x96xbf16> to vector<8x16xbf16>
    %c0_15 = arith.constant 0 : index
    %c0_16 = arith.constant 0 : index
    %c0_17 = arith.constant 0 : index
    %c0_18 = arith.constant 0 : index
    %35 = vector.load %arg7[%c0_15, %c0_16, %c0_17, %c0_18] : memref<1x2x8x16xbf16, #tpu.memory_space<vmem>>, vector<1x1x8x16xbf16>
    %36 = vector.shape_cast %35 : vector<1x1x8x16xbf16> to vector<8x16xbf16>
    %37 = vector.shape_cast %34 : vector<8x16xbf16> to vector<1x1x8x16xbf16>
    tpu.vector_store %arg7[%c0_15, %c0_16, %c0_17, %c0_18], %37 {strides = array<i32>} : memref<1x2x8x16xbf16, #tpu.memory_space<vmem>>, vector<1x1x8x16xbf16>,
    %38 = vector.extract_strided_slice %33 {offsets = [0, 32], sizes = [8, 16], strides = [1, 1]} : vector<8x96xbf16> to vector<8x16xbf16>
    %c0_19 = arith.constant 0 : index
    %c0_20 = arith.constant 0 : index
    %c0_21 = arith.constant 0 : index
    %c0_22 = arith.constant 0 : index
    %39 = vector.load %arg8[%c0_19, %c0_20, %c0_21, %c0_22] : memref<1x2x8x16xbf16, #tpu.memory_space<vmem>>, vector<1x1x8x16xbf16>
    %40 = vector.shape_cast %39 : vector<1x1x8x16xbf16> to vector<8x16xbf16>
    %41 = vector.shape_cast %38 : vector<8x16xbf16> to vector<1x1x8x16xbf16>
    tpu.vector_store %arg8[%c0_19, %c0_20, %c0_21, %c0_22], %41 {strides = array<i32>} : memref<1x2x8x16xbf16, #tpu.memory_space<vmem>>, vector<1x1x8x16xbf16>,
    %42 = vector.extract_strided_slice %33 {offsets = [0, 64], sizes = [8, 16], strides = [1, 1]} : vector<8x96xbf16> to vector<8x16xbf16>
    %c0_23 = arith.constant 0 : index
    %c0_24 = arith.constant 0 : index
    %c0_25 = arith.constant 0 : index
    %c0_26 = arith.constant 0 : index
    %43 = vector.load %arg9[%c0_23, %c0_24, %c0_25, %c0_26] : memref<1x2x8x16xbf16, #tpu.memory_space<vmem>>, vector<1x1x8x16xbf16>
    %44 = vector.shape_cast %43 : vector<1x1x8x16xbf16> to vector<8x16xbf16>
    %45 = vector.shape_cast %42 : vector<8x16xbf16> to vector<1x1x8x16xbf16>
    tpu.vector_store %arg9[%c0_23, %c0_24, %c0_25, %c0_26], %45 {strides = array<i32>} : memref<1x2x8x16xbf16, #tpu.memory_space<vmem>>, vector<1x1x8x16xbf16>,
    %46 = vector.extract_strided_slice %33 {offsets = [0, 16], sizes = [8, 16], strides = [1, 1]} : vector<8x96xbf16> to vector<8x16xbf16>
    %c0_27 = arith.constant 0 : index
    %c1 = arith.constant 1 : index
    %c0_28 = arith.constant 0 : index
    %c0_29 = arith.constant 0 : index
    %47 = vector.load %arg7[%c0_27, %c1, %c0_28, %c0_29] : memref<1x2x8x16xbf16, #tpu.memory_space<vmem>>, vector<1x1x8x16xbf16>
    %48 = vector.shape_cast %47 : vector<1x1x8x16xbf16> to vector<8x16xbf16>
    %49 = vector.shape_cast %46 : vector<8x16xbf16> to vector<1x1x8x16xbf16>
    tpu.vector_store %arg7[%c0_27, %c1, %c0_28, %c0_29], %49 {strides = array<i32>} : memref<1x2x8x16xbf16, #tpu.memory_space<vmem>>, vector<1x1x8x16xbf16>,
    %50 = vector.extract_strided_slice %33 {offsets = [0, 48], sizes = [8, 16], strides = [1, 1]} : vector<8x96xbf16> to vector<8x16xbf16>
    %c0_30 = arith.constant 0 : index
    %c1_31 = arith.constant 1 : index
    %c0_32 = arith.constant 0 : index
    %c0_33 = arith.constant 0 : index
    %51 = vector.load %arg8[%c0_30, %c1_31, %c0_32, %c0_33] : memref<1x2x8x16xbf16, #tpu.memory_space<vmem>>, vector<1x1x8x16xbf16>
    %52 = vector.shape_cast %51 : vector<1x1x8x16xbf16> to vector<8x16xbf16>
    %53 = vector.shape_cast %50 : vector<8x16xbf16> to vector<1x1x8x16xbf16>
    tpu.vector_store %arg8[%c0_30, %c1_31, %c0_32, %c0_33], %53 {strides = array<i32>} : memref<1x2x8x16xbf16, #tpu.memory_space<vmem>>, vector<1x1x8x16xbf16>,
    %54 = vector.extract_strided_slice %33 {offsets = [0, 80], sizes = [8, 16], strides = [1, 1]} : vector<8x96xbf16> to vector<8x16xbf16>
    %c0_34 = arith.constant 0 : index
    %c1_35 = arith.constant 1 : index
    %c0_36 = arith.constant 0 : index
    %c0_37 = arith.constant 0 : index
    %55 = vector.load %arg9[%c0_34, %c1_35, %c0_36, %c0_37] : memref<1x2x8x16xbf16, #tpu.memory_space<vmem>>, vector<1x1x8x16xbf16>
    %56 = vector.shape_cast %55 : vector<1x1x8x16xbf16> to vector<8x16xbf16>
    %57 = vector.shape_cast %54 : vector<8x16xbf16> to vector<1x1x8x16xbf16>
    tpu.vector_store %arg9[%c0_34, %c1_35, %c0_36, %c0_37], %57 {strides = array<i32>} : memref<1x2x8x16xbf16, #tpu.memory_space<vmem>>, vector<1x1x8x16xbf16>,
    return
  }
  func.func @transform_0(%arg0: i32, %arg1: i32) -> (i32, i32, i32) {
    %c0_i32 = arith.constant 0 : i32
    %c0_i32_0 = arith.constant 0 : i32
    return %arg0, %arg1, %c0_i32 : i32, i32, i32
  }
  func.func @transform_1(%arg0: i32, %arg1: i32) -> (i32, i32) {
    %c0_i32 = arith.constant 0 : i32
    %c0_i32_0 = arith.constant 0 : i32
    %c0_i32_1 = arith.constant 0 : i32
    return %c0_i32, %c0_i32_0 : i32, i32
  }
  func.func @transform_2(%arg0: i32, %arg1: i32) -> (i32, i32) {
    %c0_i32 = arith.constant 0 : i32
    %c0_i32_0 = arith.constant 0 : i32
    %c0_i32_1 = arith.constant 0 : i32
    return %c0_i32, %c0_i32_0 : i32, i32
  }
  func.func @transform_3(%arg0: i32, %arg1: i32) -> (i32, i32) {
    %c0_i32 = arith.constant 0 : i32
    %c0_i32_0 = arith.constant 0 : i32
    %c0_i32_1 = arith.constant 0 : i32
    return %c0_i32, %c0_i32_0 : i32, i32
  }
  func.func @transform_4(%arg0: i32, %arg1: i32) -> (i32, i32) {
    %c0_i32 = arith.constant 0 : i32
    %c0_i32_0 = arith.constant 0 : i32
    %c0_i32_1 = arith.constant 0 : i32
    return %c0_i32, %c0_i32_0 : i32, i32
  }
  func.func @transform_5(%arg0: i32, %arg1: i32) -> (i32, i32, i32, i32) {
    %c0_i32 = arith.constant 0 : i32
    %c0_i32_0 = arith.constant 0 : i32
    %c0_i32_1 = arith.constant 0 : i32
    return %arg0, %c0_i32, %arg1, %c0_i32_0 : i32, i32, i32, i32
  }
  func.func @transform_6(%arg0: i32, %arg1: i32) -> (i32, i32, i32, i32) {
    %c0_i32 = arith.constant 0 : i32
    %c0_i32_0 = arith.constant 0 : i32
    %c0_i32_1 = arith.constant 0 : i32
    return %arg0, %c0_i32, %arg1, %c0_i32_0 : i32, i32, i32, i32
  }
  func.func @transform_7(%arg0: i32, %arg1: i32) -> (i32, i32, i32, i32) {
    %c0_i32 = arith.constant 0 : i32
    %c0_i32_0 = arith.constant 0 : i32
    %c0_i32_1 = arith.constant 0 : i32
    return %arg0, %c0_i32, %arg1, %c0_i32_0 : i32, i32, i32, i32
  }
}

</mosaic_0001>

<bundles_post_ra>
// kernel: tpu_custom_call.1
= control target key start
LH: loop header
LB: loop body
LE: loop exit
PB: predicated region body
PF: predicated region fallthrough
CT: control target
= control target key end

     0   :  { %s1426_s0 = inlined_call_operand.hbm [shape: bf16[2,8,32], index: 0, kind: input, shape index: {}]   ;;  %s1427_s1 = inlined_call_operand.hbm [shape: bf16[32,96], index: 1, kind: input, shape index: {}]   ;;  %s1428_s2 = inlined_call_operand.vmem [shape: f32[1,96], index: 2, kind: input, shape index: {}]   ;;  %s1429_s3 = inlined_call_operand.vmem [shape: f32[1,32], index: 3, kind: input, shape index: {}]   ;;  %s1430_s4 = inlined_call_operand.vmem [shape: f32[1,32], index: 4, kind: input, shape index: {}]   ;;  %s1431_s5 = inlined_call_operand.hbm [shape: bf16[2,2,8,16], index: 5, kind: output, shape index: {0}]   ;;  %s1432_s6 = inlined_call_operand.hbm [shape: bf16[2,2,8,16], index: 6, kind: output, shape index: {1}]   ;;  %s1433_s7 = inlined_call_operand.hbm [shape: bf16[2,2,8,16], index: 7, kind: output, shape index: {2}]  }
   0x1   :  { %1441 = sst [smem:[#allocation16_spill]] %s1426_s0 }
   0x2   :  { %1442 = sst [smem:[#allocation17_spill]] %s1427_s1 }
   0x3   :  { %1443 = sst [smem:[#allocation18_spill]] %s1428_s2 }
   0x4   :  { %1444 = sst [smem:[#allocation19_spill]] %s1429_s3 }
   0x5   :  { %13 = vsyncpa [#allocation3], 0 }
   0x6   :  { %15 = vsyncpa [#allocation3 + $0x1], 0 }
   0x7   :  { %16 = vsyncpa [#allocation6], 0 }
   0x8   :  { %17 = vsyncpa [#allocation4], 0 }
   0x9   :  { %19 = vsyncpa [#allocation4 + $0x1], 0 }
   0xa   :  { %20 = vsyncpa [#allocation9], 0 }
   0xb   :  { %22 = vsyncpa [#allocation9 + $0x1], 0  ;;  %s1103_s24 = smov 0   ;;  %s1105_s25 = smov 0  }
   0xc   :  { %s1107_s26 = smov 0   ;;  %s1109_s27 = smov 0  }
   0xd   :  { %s1111_s28 = smov 0   ;;  %s1113_s29 = smov 0  }
   0xe LB: > { %s1134_s30 = sadd.s32 4294967295, %s1046_s29   ;;  %s1437_s8 = sadd.s32 4294967294, %s1046_s29   ;;  %s1046_s29 = sphi %s1113_s29, %s28_s29   ;;  %s1042_s28 = sphi %s1111_s28, %s1471_s28   ;;  %s1038_s27 = sphi %s1109_s27, %s1470_s27   ;;  %s1034_s26 = sphi %s1107_s26, %s1469_s26   ;;  %s1030_s25 = sphi %s1105_s25, %s1468_s25   ;;  %s1026_s24 = sphi %s1103_s24, %s1467_s24  }
   0xf   : > { %p62_p0 = scmp.ne.s32.totalorder %s1030_s25, %s1026_s24  ;;  %p1434_p1 = scmp.eq.s32.totalorder %s1134_s30, 0 }
  0x10   : > { %p178_p3 = scmp.eq.s32.totalorder %s1437_s8, 1  ;;  %p698_p5 = scmp.ge.s32.totalorder %s1046_s29, 1 }
  0x11   : > { %p1145_p4 = por %p1434_p1, %p62_p0  ;;  %p241_p7 = scmp.lt.s32.totalorder %s1046_s29, 3 }
  0x12   : > { %p1150_p6 = por %p178_p3, %p62_p0  ;;  %s1048_s12 = smov [#allocation5]  }
  0x13   : > { %s1445_s9 = scalar_select %p1145_p4, 1, 0 }
  0x14   : > { %s1446_s10 = scalar_select %p1150_p6, 1, 0 }
  0x15   : > { %p1155_p8 = pnand %p698_p5, %p241_p7  ;;  %s253_s13 = sshll.u32 %s1048_s12, 4  ;;  %s254_s13 = int_to_ptr.vmem [resolvable:$true] %s253_s13 }
  0x16   : > { %s40_s15 = sadd.s32 1, %s1042_s28  ;;  %s1449_s1 = sld [smem:[#allocation17_spill]] }
  0x17   : > { %s1447_s11 = scalar_select %p1155_p8, 1, 0 }
  0x18   : > { %p757_p9 = pneg %p1155_p8 }
  0x1a   : > { %p1164_p11 = pnand %p757_p9, %p1434_p1 }
  0x1c   : > { %s842_s18 = scalar_lea.hbm %s1449_s1, 256  ;;  %p844_p13 = pneg %p1164_p11 }
  0x1d   : > { %p843_p12 = scmp.ne.s32.totalorder %s1449_s1, %s842_s18  ;;  %p849_p5 = scmp.lt.u32.totalorder %s842_s18, %s1449_s1 }
  0x1f   : > { %p845_p0 = pnand %p844_p13, %p843_p12 }
  0x21   : > { %p846_p3 = pneg %p845_p0 }
  0x23   : > { %p851_p7 = pnand %p849_p5, %p846_p3 }
  0x25   : > { %854 = shalt.err (!%p851_p7)
}
  0x26   : > { %s855_s23 = scalar_lea.vmem %s254_s13, 256  ;;  %p863_p2 = scmp.lt.s32.totalorder %s254_s13, %s254_s13 }
  0x27   : > { %p856_p9 = scmp.ne.s32.totalorder %s254_s13, %s855_s23  ;;  %p864_p6 = scmp.lt.s32.totalorder %s855_s23, %s855_s23 }
  0x29   : > { %p858_p10 = pnand %p856_p9, %p844_p13  ;;  %p865_p4 = por %p864_p6, %p863_p2 }
  0x2b   : > { %p859_p1 = pneg %p858_p10 }
  0x2d   : > { %p866_p8 = pnand %p865_p4, %p859_p1 }
  0x2f   : > { %869 = shalt.err (!%p866_p8)
}
  0x30   : > { %s1049_s12 = smov 64   ;;  %s1050_s16 = smov 4  }
  0x31   : > { %760 = dma.hbm_to_vmem [thread:$0]  (!%p1164_p11), %s1449_s1, 256, %s254_s13, [#allocation6], %s1049_s12, %s1049_s12, %s1050_s16  }
  0x32   : > { %p42_p1 = scmp.ge.s32.totalorder %s40_s15, 2  ;;  %s49_s19 = sadd.s32 1, %s1034_s26 }
  0x33   : > { %p56_p2 = scmp.ne.s32.totalorder %s1034_s26, %s1030_s25  ;;  %p57_p4 = scmp.eq.s32.totalorder %s1046_s29, 0 }
  0x34   : > { %s1473_s15 = smov (%p42_p1, %s40_s15), 0  ;;  %p1452_p8 = scmp.eq.s32.totalorder %s1134_s30, 1 }
  0x35   : > { %1450 = sst [smem:[#allocation15_spill]] %s1473_s15  ;;  %p1191_p6 = por %p57_p4, %p56_p2 }
  0x36   : > { %p1197_p10 = por %p1452_p8, %p56_p2  ;;  %s44_s14 = ssub.s32 %s1042_s28, %s1473_s15 }
  0x37   : > { %p776_p12 = scmp.lt.s32.totalorder %s1046_s29, 2  ;;  %p47_p11 = scmp.eq.s32.totalorder %s44_s14, 0 }
  0x38   : > { %s276_s13 = sand.u32 1, %s1034_s26   ;;  %s702_s12 = sshll.u32 %s1042_s28, 6 }
  0x39   : > { %s701_s22 = sshll.u32 %s276_s13, 2  ;;  %s1454_s0 = sld [smem:[#allocation16_spill]] }
  0x3a   : > { %s1206_s23 = scalar_select %p47_p11, %s1034_s26, %s49_s19  }
  0x3b   : > { %s280_s8 = scalar_lea.vmem [#allocation2], %s701_s22  ;;  %p1218_p13 = pnand %p776_p12, %p1191_p6 }
  0x3c   : > { %s288_s1 = sshll.u32 %s280_s8, 4  ;;  %s277_s19 = scalar_lea.sflag [#allocation3], %s276_s13  ;;  %s1214_s1 = int_to_ptr.vmem [resolvable:$true] %s288_s1 }
  0x3d   : > { %p872_p3 = pneg %p1218_p13 }
  0x3f   : > { %s1212_s18 = scalar_lea.hbm %s1454_s0, %s702_s12  ;;  %s875_s12 = scalar_lea.hbm %s1454_s0, 128 }
  0x40   : > { %s870_s15 = scalar_lea.hbm %s1212_s18, 64  ;;  %p876_p9 = scmp.lt.u32.totalorder %s1212_s18, %s1454_s0 }
  0x41   : > { %p871_p0 = scmp.ne.s32.totalorder %s1212_s18, %s870_s15  ;;  %p877_p1 = scmp.lt.u32.totalorder %s875_s12, %s870_s15 }
  0x42   : > { %p879_p4 = scmp.lt.u32.totalorder %s870_s15, %s1212_s18 }
  0x43   : > { %p873_p5 = pnand %p872_p3, %p871_p0  ;;  %p878_p2 = por %p877_p1, %p876_p9 }
  0x45   : > { %p874_p7 = pneg %p873_p5  ;;  %p880_p6 = por %p879_p4, %p878_p2 }
  0x47   : > { %p881_p8 = pnand %p880_p6, %p874_p7 }
  0x49   : > { %884 = shalt.err (!%p881_p8)
}
  0x4a   : > { %s885_s13 = scalar_lea.vmem %s1214_s1, 64  ;;  %s1051_s17 = smov [#allocation2]  }
  0x4b   : > { %p886_p12 = scmp.ne.s32.totalorder %s1214_s1, %s885_s13  ;;  %s890_s22 = sshll.u32 %s1051_s17, 4  ;;  %s891_s22 = int_to_ptr.vmem [resolvable:$false] %s890_s22 }
  0x4c   : > { %s892_s8 = scalar_lea.vmem %s891_s22, 128  ;;  %p893_p5 = scmp.lt.s32.totalorder %s1214_s1, %s891_s22 }
  0x4d   : > { %p888_p11 = pnand %p886_p12, %p872_p3  ;;  %p894_p9 = scmp.lt.s32.totalorder %s892_s8, %s885_s13 }
  0x4f   : > { %p889_p0 = pneg %p888_p11  ;;  %p895_p1 = por %p894_p9, %p893_p5 }
  0x51   : > { %p896_p2 = pnand %p895_p1, %p889_p0 }
  0x53   : > { %899 = shalt.err (!%p896_p2)
}
  0x54   : > { %764 = dma.hbm_to_vmem [thread:$0]  (!%p1218_p13), %s1212_s18, 64, %s1214_s1, %s277_s19  }
  0x55   : > { %p1456_p7 = scmp.ne.s32.totalorder %s1447_s11, 0 }
  0x56   : > { %s1250_s15 = sand.u32 (!%p1456_p7), 1, %s1030_s25   ;;  %p1457_p3 = scmp.ne.s32.totalorder (!%p1456_p7), %s1445_s9, 0 }
  0x57   : > { %297 = sbr.rel (%p1456_p7) target bundleno = 813 (0x32d), region = 40  ;;  %s704_s12 = sshll.u32 (!%p1456_p7), %s1250_s15, 2 }
  0x58   : > { %s300_s20 = scalar_lea.sflag (!%p1456_p7), [#allocation3], %s1250_s15  ;;  %s303_s16 = scalar_lea.vmem (!%p1456_p7), [#allocation2], %s704_s12 }
  0x5e   : > { %1009 = dma.done.wait (%p1457_p3), %s300_s20, 64  }
  0x5f   : > { %1011 = vsyncadd (%p1457_p3), %s300_s20, 4294967232  ;;  %p1458_p4 = scmp.eq.s32.totalorder %s1134_s30, 0 }
  0x61   : > { %1013 = dma.done.wait (%p1458_p4), [#allocation6], 256   ;;  %p1459_p13 = pmov %p1458_p4 }
  0x62   : > { %vm353_vm0 = vcmask 261120   ;;  %v349_v0 = vld [vmem:[%s303_s16] sm:$0xf]  ;;  %v838_v8 = vld [vmem:[#allocation5] sm:$0xff]   ;;  %v1052_v9 = vmov 0.0   ;;  %vm1053_vm1 = vmmov 0  }
  0x63   : > { %1015 = vsyncadd (%p1459_p13), [#allocation6], 4294967040  ;;  %v350_v1 = vunpack.c.l.bf16 %v349_v0  ;;  %737 = vmatprep.subr.bf16.mxu0 %v1052_v9  ;;  %741 = vmatprep.mubr.msk.bf16.mxu0 %vm1053_vm1, %v1052_v9  ;;  %v839_v10 = vld [vmem:[#allocation5 + $0x8] sm:$0xff]   ;;  %s1460_s3 = sld [smem:[#allocation19_spill]]  ;;  %v710_v17 = vld [vmem:[%s1430_s4] ss:$0 sm:$0xff] }
  0x64   : > { %738 = vmatpush3.bf16.msra.mxu0 %v838_v8  ;;  %s1461_s2 = sld [smem:[#allocation18_spill]]  ;;  %s706_s13 = sshll.u32 %s1250_s15, 3  ;;  %vm450_vm2 = vcmask 125952  }
  0x65   : > { %v354_v2 = vsel %vm353_vm0, %v350_v1, 0.0  ;;  %739 = vmatprep.subr.bf16.mxu0 %v1052_v9  ;;  %s1439_s17 = smov 64   ;;  %s1055_s22 = smov 96  }
  0x66   : > { %355 = vadd.xlane.f32.xlu0 %v354_v2  ;;  %s1276_s8 = scalar_lea.vmem [#allocation7], %s706_s13  ;;  %s1056_s12 = smov 80  }
  0x67   : > { %s1057_s20 = smov 112   ;;  %s1058_s16 = smov 48  }
  0x68   : > { %740 = vmatpush3.bf16.msra.mxu0 %v839_v10  ;;  %s340_s1 = scalar_lea.vmem [#allocation8], %s706_s13  ;;  %s483_s11 = sand.u32 1, %s1134_s30  }
  0x69   : > { %v709_v15 = vld [vmem:[%s1460_s3] ss:$0 sm:$0xff]  ;;  %s520_s9 = sshll.u32 %s340_s1, 4  ;;  %s1282_s18 = sshll.u32 %s1038_s27, 7  ;;  %s1288_s9 = int_to_ptr.vmem [resolvable:$true] %s520_s9 }
  0x6a   : > { %v711_v21 = vld [vmem:[%s1461_s2] ss:$0 sm:$0xff]  ;;  %s1284_s14 = scalar_lea.vmem [#allocation10], %s706_s13  ;;  %s503_s19 = sshll.u32 %s1276_s8, 4  ;;  %s1299_s19 = int_to_ptr.vmem [resolvable:$true] %s503_s19 }
  0x6b   : > { %s1301_s27 = scalar_lea.sflag [#allocation9], %s483_s11  ;;  %s900_s13 = scalar_lea.vmem %s1288_s9, 128 }
  0x6c   : > { %p901_p6 = scmp.ne.s32.totalorder %s1288_s9, %s900_s13 }
  0x6e   : > { %p902_p8 = pnand %p901_p6, %p1197_p10 }
  0x70   : > { %p903_p12 = pneg %p902_p8 }
  0xf3   : > { %v356_v3 = vpop.xlane.xlu0 %355 }
  0xf4   : > { %v358_v4 = vmul.f32 0.03125, %v356_v3 }
  0xf6   : > { %v359_v5 = vsub.f32 %v350_v1, %v358_v4 }
  0xf8   : > { %v360_v6 = vmul.f32 %v359_v5, %v359_v5 }
  0xfa   : > { %v361_v7 = vsel %vm353_vm0, %v360_v6, 0.0 }
  0xfb   : > { %362 = vadd.xlane.f32.xlu0 %v361_v7 }
 0x188   : > { %v363_v11 = vpop.xlane.xlu0 %362 }
 0x189   : > { %v364_v12 = vmul.f32 0.03125, %v363_v11 }
 0x18b   : > { %v365_v13 = vadd.f32 1e-12, %v364_v12 }
 0x18d   : > { %840 = vrsqrt.f32 %v365_v13 }
 0x197   : > { %v841_v14 = vpop.eup %840 }
 0x198   : > { %v367_v16 = vmul.f32 %v841_v14, %v359_v5 }
 0x19a   : > { %v374_v18 = vmul.f32 %v709_v15, %v367_v16 }
 0x19c   : > { %v381_v19 = vadd.f32 %v710_v17, %v374_v18 }
 0x19e   : > { %v382_v20 = vpack.c.bf16 %v381_v19, %v381_v19 }
 0x1a0   : > { %742 = vmatmul.mubr.msk.bf16.vlgmr.msra.gmra.mrb[0].mxu0 %vm353_vm0, %v382_v20 }
 0x273   : > { %v443_v22 = vpop.f32.mrb[0].mxu0 }
 0x274   : > { %v444_v23 = vadd.f32 %v711_v21, %v443_v22  ;;  %v743_v24 = vpop.f32.mrb[1].mxu0 }
 0x275   : > { %v446_v25 = vpop.f32.mrb[2].mxu0 }
 0x276   : > { %v449_v26 = vpack.c.bf16 %v444_v23, %v444_v23  ;;  %v744_v27 = vpop.f32.mrb[3].mxu0 }
 0x278   : > { %459 = vrot.lane.b32.xlu0 %v449_v26, %s1439_s17  ;;  %455 = vrot.lane.b32.xlu1 %v449_v26, %s1055_s22  ;;  %451 = vst.msk [vmem:[%s1276_s8] sm:$0xf] %vm450_vm2, %v449_v26 }
 0x27c   : > { %468 = vrot.lane.b32.xlu1 %v449_v26, %s1056_s12  ;;  %s1296_s12 = scalar_lea.hbm %s1432_s6, %s1282_s18 }
 0x280   : > { %463 = vrot.lane.b32.xlu1 %v449_v26, %s1057_s20  ;;  %s1059_s20 = smov [#allocation8]  }
 0x284   : > { %473 = vrot.lane.b32.xlu1 %v449_v26, %s1058_s16  ;;  %s904_s16 = sshll.u32 %s1059_s20, 4  ;;  %s905_s16 = int_to_ptr.vmem [resolvable:$false] %s904_s16 }
 0x285   : > { %s906_s17 = scalar_lea.vmem %s905_s16, 256  ;;  %p907_p11 = scmp.lt.s32.totalorder %s1288_s9, %s905_s16 }
 0x286   : > { %p908_p0 = scmp.lt.s32.totalorder %s906_s17, %s900_s13 }
 0x288   : > { %p909_p5 = por %p908_p0, %p907_p11 }
 0x28a   : > { %p910_p9 = pnand %p909_p5, %p903_p12 }
 0x2ea   : > { %v460_v28 = vpop.permute.xlu0 %459  ;;  %v456_v29 = vpop.permute.xlu1 %455 }
 0x2eb   : > { %462 = vst.msk [vmem:[%s1284_s14] sm:$0xf] %vm450_vm2, %v460_v28  ;;  %458 = vst.msk [vmem:[%s340_s1] sm:$0xf] %vm450_vm2, %v456_v29 }
 0x2ee   : > { %v469_v30 = vpop.permute.xlu1 %468 }
 0x2ef   : > { %717 = vst.msk [vmem:[%s340_s1 + $0x4] sm:$0xf] %vm450_vm2, %v469_v30 }
 0x2f0   : > { %913 = shalt.err (!%p910_p9)
}
 0x2f1   : > { %s914_s1 = scalar_lea.hbm %s1296_s12, 128  ;;  %s918_s22 = scalar_lea.hbm %s1432_s6, 256 }
 0x2f2   : > { %p915_p1 = scmp.ne.s32.totalorder %s1296_s12, %s914_s1  ;;  %p919_p3 = scmp.lt.u32.totalorder %s1296_s12, %s1432_s6 }
 0x2f3   : > { %p920_p4 = scmp.lt.u32.totalorder %s918_s22, %s914_s1  ;;  %p922_p6 = scmp.lt.u32.totalorder %s914_s1, %s1296_s12 }
 0x2f4   : > { %p916_p2 = pnand %p915_p1, %p1197_p10 }
 0x2f5   : > { %p921_p13 = por %p920_p4, %p919_p3 }
 0x2f6   : > { %p917_p7 = pneg %p916_p2 }
 0x2f7   : > { %p923_p8 = por %p922_p6, %p921_p13 }
 0x2f9   : > { %p924_p12 = pnand %p923_p8, %p917_p7 }
 0x2fb   : > { %927 = shalt.err (!%p924_p12)
}
 0x2fc   : > { %s1060_s17 = smov 4   ;;  %s1462_s13 = smov 64   ;;  %v464_v31 = vpop.permute.xlu1 %463 }
 0x2fd   : > { %752 = dma.vmem_to_hbm [thread:$0]  (%p1197_p10), %s1288_s9, 128, %s1296_s12, %s1301_s27, %s1462_s13, %s1462_s13, %s1060_s17  }
 0x2fe   : > { %s1332_s30 = scalar_lea.hbm %s1431_s5, %s1282_s18  ;;  %s537_s22 = sshll.u32 %s1284_s14, 4  ;;  %716 = vst.msk [vmem:[%s1276_s8 + $0x4] sm:$0xf] %vm450_vm2, %v464_v31  ;;  %s1366_s22 = int_to_ptr.vmem [resolvable:$true] %s537_s22 }
 0x2ff   : > { %s479_s20 = scalar_lea.sflag [#allocation4], %s1250_s15  ;;  %s928_s16 = scalar_lea.vmem %s1299_s19, 128 }
 0x300   : > { %p929_p11 = scmp.ne.s32.totalorder %s1299_s19, %s928_s16  ;;  %s1061_s0 = smov [#allocation7]  }
 0x301   : > { %s932_s2 = sshll.u32 %s1061_s0, 4  ;;  %s933_s2 = int_to_ptr.vmem [resolvable:$false] %s932_s2 }
 0x302   : > { %p930_p0 = pnand %p929_p11, %p1197_p10  ;;  %s934_s3 = scalar_lea.vmem %s933_s2, 256 }
 0x303   : > { %p935_p9 = scmp.lt.s32.totalorder %s1299_s19, %s933_s2  ;;  %p936_p1 = scmp.lt.s32.totalorder %s934_s3, %s928_s16 }
 0x304   : > { %p931_p5 = pneg %p930_p0 }
 0x305   : > { %p937_p2 = por %p936_p1, %p935_p9 }
 0x307   : > { %p938_p7 = pnand %p937_p2, %p931_p5 }
 0x309   : > { %941 = shalt.err (!%p938_p7)
}
 0x30a   : > { %s942_s8 = scalar_lea.hbm %s1332_s30, 128  ;;  %s946_s0 = scalar_lea.hbm %s1431_s5, 256 }
 0x30b   : > { %p943_p3 = scmp.ne.s32.totalorder %s1332_s30, %s942_s8  ;;  %p947_p6 = scmp.lt.u32.totalorder %s1332_s30, %s1431_s5 }
 0x30c   : > { %p948_p8 = scmp.lt.u32.totalorder %s946_s0, %s942_s8  ;;  %p950_p11 = scmp.lt.u32.totalorder %s942_s8, %s1332_s30 }
 0x30d   : > { %p944_p4 = pnand %p943_p3, %p1197_p10 }
 0x30e   : > { %p949_p12 = por %p948_p8, %p947_p6 }
 0x30f   : > { %p945_p13 = pneg %p944_p4 }
 0x310   : > { %p951_p0 = por %p950_p11, %p949_p12 }
 0x312   : > { %p952_p5 = pnand %p951_p0, %p945_p13 }
 0x314   : > { %955 = shalt.err (!%p952_p5)
}
 0x315   : > { %751 = dma.vmem_to_hbm [thread:$0]  (%p1197_p10), %s1299_s19, 128, %s1332_s30, %s479_s20, %s1462_s13, %s1462_s13, %s1060_s17   ;;  %v474_v32 = vpop.permute.xlu1 %473 }
 0x316   : > { %s1372_s16 = scalar_lea.hbm %s1433_s7, %s1282_s18  ;;  %718 = vst.msk [vmem:[%s1284_s14 + $0x4] sm:$0xf] %vm450_vm2, %v474_v32  ;;  %s956_s15 = scalar_lea.vmem %s1366_s22, 128 }
 0x317   : > { %p957_p9 = scmp.ne.s32.totalorder %s1366_s22, %s956_s15  ;;  %s1062_s19 = smov [#allocation10]  }
 0x318   : > { %s960_s30 = sshll.u32 %s1062_s19, 4  ;;  %s961_s30 = int_to_ptr.vmem [resolvable:$false] %s960_s30 }
 0x319   : > { %p958_p1 = pnand %p957_p9, %p1197_p10  ;;  %s962_s20 = scalar_lea.vmem %s961_s30, 256 }
 0x31a   : > { %p963_p7 = scmp.lt.s32.totalorder %s1366_s22, %s961_s30  ;;  %p964_p3 = scmp.lt.s32.totalorder %s962_s20, %s956_s15 }
 0x31b   : > { %p959_p2 = pneg %p958_p1 }
 0x31c   : > { %p965_p4 = por %p964_p3, %p963_p7 }
 0x31e   : > { %p966_p13 = pnand %p965_p4, %p959_p2 }
 0x320   : > { %969 = shalt.err (!%p966_p13)
}
 0x321   : > { %s970_s18 = scalar_lea.hbm %s1372_s16, 128  ;;  %s974_s9 = scalar_lea.hbm %s1433_s7, 256 }
 0x322   : > { %p971_p6 = scmp.ne.s32.totalorder %s1372_s16, %s970_s18  ;;  %p975_p11 = scmp.lt.u32.totalorder %s1372_s16, %s1433_s7 }
 0x323   : > { %p976_p0 = scmp.lt.u32.totalorder %s974_s9, %s970_s18  ;;  %p978_p9 = scmp.lt.u32.totalorder %s970_s18, %s1372_s16 }
 0x324   : > { %p972_p8 = pnand %p971_p6, %p1197_p10 }
 0x325   : > { %p977_p5 = por %p976_p0, %p975_p11 }
 0x326   : > { %p973_p12 = pneg %p972_p8 }
 0x327   : > { %p979_p1 = por %p978_p9, %p977_p5 }
 0x329   : > { %p980_p2 = pnand %p979_p1, %p973_p12 }
 0x32b   : > { %983 = shalt.err (!%p980_p2)
}
 0x32c   : > { %753 = dma.vmem_to_hbm [thread:$0]  (%p1197_p10), %s1366_s22, 128, %s1372_s16, %s1301_s27, %s1462_s13, %s1462_s13, %s1060_s17  }
 0x32d PF: > { %s552_s1 = sand.u32 1, %s1026_s24   ;;  %p1463_p7 = scmp.ne.s32.totalorder %s1446_s10, 0 }
 0x32e   : > { %p1464_p3 = scmp.ge.s32.totalorder %s1046_s29, 2  ;;  %s553_s2 = scalar_lea.sflag [#allocation4], %s552_s1 }
 0x330   : > { %p766_p4 = pnand %p1464_p3, %p1463_p7 }
 0x332   : > { %1017 = dma.done.wait (!%p766_p4), %s553_s2, 128  }
 0x333   : > { %1019 = vsyncadd (!%p766_p4), %s553_s2, 4294967168  ;;  %s1465_s21 = sadd.s32 4294967294, %s1046_s29  }
 0x334   : > { %s561_s3 = sand.u32 1, %s1465_s21  }
 0x335   : > { %s562_s11 = scalar_lea.sflag [#allocation9], %s561_s3 }
 0x336   : > { %1021 = dma.done.wait (!%p766_p4), %s562_s11, 256  }
 0x337   : > { %1023 = vsyncadd (!%p766_p4), %s562_s11, 4294967040  ;;  %s28_s29 = sadd.s32 1, %s1046_s29   ;;  %s1466_s17 = sld [smem:[#allocation15_spill]] }
 0x338   : > { %p25_p10 = scmp.ge.s32.totalorder %s28_s29, 4   ;;  %s1467_s24 = smov %s1030_s25 }
 0x339   : > { %s1468_s25 = smov %s1034_s26  ;;  %s1469_s26 = smov %s1206_s23 }
 0x33a   : > { %s1470_s27 = smov %s1042_s28  ;;  %27 = sbr.rel (!%p25_p10) target bundleno = 14 (0xe), region = 124 }
 0x33d   : > { %s1471_s28 = smov %s1466_s17 }
 0x341   :  { %576 = vsyncpa [#allocation3], 1 }
 0x342   :  { %578 = vsyncpa [#allocation3 + $0x1], 1 }
 0x343   :  { %579 = vsyncpa [#allocation6], 1 }
 0x344   :  { %580 = vsyncpa [#allocation4], 1 }
 0x345   :  { %582 = vsyncpa [#allocation4 + $0x1], 1 }
 0x346   :  { %583 = vsyncpa [#allocation9], 1 }
 0x347   :  { %585 = vsyncpa [#allocation9 + $0x1], 1 }

</bundles_post_ra>
